<compile_context>
chip_gen: v7x
topology: tpu7x:2x2x1
jax: 0.10.0
libtpu: 0.0.40
codegen_flags: <defaults>
</compile_context>

<pallas_src>
import jax
import jax.numpy as jnp
from jax.experimental import pallas as pl
from jax.experimental.pallas import tpu as pltpu


def _linreg_kernel(w_ref, b_ref, x_ref, o_ref):
    # w_ref / b_ref: (1, 1) scalars in SMEM; x_ref / o_ref: (tile_rows, LANE) in VMEM.
    w = w_ref[0, 0]
    b = b_ref[0, 0]
    o_ref[...] = w * x_ref[...] + b


def linear_regression_forward(x, weight, bias, *, lane_width=512, max_tile_rows=1024):
    """y = weight * x + bias (scalar broadcast over any input shape, like PyTorch)."""
    orig_shape = x.shape
    total = x.size

    # ---- layout plumbing: flatten to a lane-dense [rows, lane_width] slab ----
    rows = -(-total // lane_width)                       # cdiv(total, lane_width)
    tile_rows = min(max_tile_rows, ((rows + 7) // 8) * 8)  # multiple of 8, capped
    padded_rows = ((rows + tile_rows - 1) // tile_rows) * tile_rows
    padded_total = padded_rows * lane_width

    x_flat = jnp.ravel(x)
    if padded_total != total:
        x_flat = jnp.pad(x_flat, (0, padded_total - total))
    x2d = x_flat.reshape(padded_rows, lane_width)

    # Scalars go to SMEM as (1, 1) arrays.
    w = jnp.asarray(weight, dtype=x.dtype).reshape(1, 1)
    b = jnp.asarray(bias, dtype=x.dtype).reshape(1, 1)

    grid = (padded_rows // tile_rows,)

    y2d = pl.pallas_call(
        _linreg_kernel,
        out_shape=jax.ShapeDtypeStruct((padded_rows, lane_width), x.dtype),
        grid=grid,
        in_specs=[
            pl.BlockSpec(memory_space=pltpu.SMEM),                       # weight (1,1)
            pl.BlockSpec(memory_space=pltpu.SMEM),                       # bias   (1,1)
            pl.BlockSpec((tile_rows, lane_width), lambda i: (i, 0)),     # x tile
        ],
        out_specs=pl.BlockSpec((tile_rows, lane_width), lambda i: (i, 0)),
        compiler_params=pltpu.CompilerParams(
            dimension_semantics=("parallel",),           # shard grid across TCs on v7x
            vmem_limit_bytes=32 * 1024 * 1024,           # headroom for big tiles (v5e's 16 MiB default)
        ),
    )(w, b, x2d)

    # Strip padding and restore the original shape.
    return y2d.reshape(-1)[:total].reshape(orig_shape)


if __name__ == "__main__":
    key = jax.random.PRNGKey(0)
    k_x, k_w, k_b = jax.random.split(key, 3)

    # Deterministic "randn"-style parameter init (shapes (1,) as in the module).
    weight = jax.random.normal(k_w, (1,), dtype=jnp.float32)
    bias = jax.random.normal(k_b, (1,), dtype=jnp.float32)

    # Small example input: [N=16, D=128] float32 (exercises the padding path too).
    x = jax.random.normal(k_x, (16, 128), dtype=jnp.float32)

    y = linear_regression_forward(x, weight, bias)
    y = jax.block_until_ready(y)

    # Reference check against plain JAX broadcast semantics (same as PyTorch).
    y_ref = weight[0] * x + bias[0]
    assert y.shape == x.shape and y.dtype == x.dtype
    assert jnp.allclose(y, y_ref, atol=1e-6, rtol=1e-6)

    print("KERNEL_OK")
</pallas_src>

<mosaic_0001>
module attributes {stable_mosaic.version = 11 : i64} {
  func.func @_linreg_kernel(%arg0: i32, %arg1: memref<1x1xf32, #tpu.memory_space<smem>>, %arg2: memref<1x1xf32, #tpu.memory_space<smem>>, %arg3: memref<8x512xf32, #tpu.memory_space<vmem>>, %arg4: memref<8x512xf32, #tpu.memory_space<vmem>>) attributes {dimension_semantics = [#tpu.dimension_semantics<parallel>], iteration_bounds = array<i64: 1>, scalar_prefetch = 0 : i64, scratch_operands = 0 : i64, tpu.core_type = #tpu.core_type<tc>, window_params = [{transform_indices = @transform_0, window_bounds = array<i64: 1, 1>}, {transform_indices = @transform_1, window_bounds = array<i64: 1, 1>}, {transform_indices = @transform_2, window_bounds = array<i64: 8, 512>}, {transform_indices = @transform_3, window_bounds = array<i64: 8, 512>}]} {
    %c0 = arith.constant 0 : index
    %c0_0 = arith.constant 0 : index
    %0 = memref.load %arg1[%c0, %c0_0] : memref<1x1xf32, #tpu.memory_space<smem>>
    %c0_1 = arith.constant 0 : index
    %c0_2 = arith.constant 0 : index
    %1 = memref.load %arg2[%c0_1, %c0_2] : memref<1x1xf32, #tpu.memory_space<smem>>
    %c0_3 = arith.constant 0 : index
    %c0_4 = arith.constant 0 : index
    %2 = vector.load %arg3[%c0_3, %c0_4] : memref<8x512xf32, #tpu.memory_space<vmem>>, vector<8x512xf32>
    %3 = vector.broadcast %0 : f32 to vector<8x512xf32>
    %4 = arith.mulf %3, %2 : vector<8x512xf32>
    %5 = vector.broadcast %1 : f32 to vector<8x512xf32>
    %6 = arith.addf %4, %5 : vector<8x512xf32>
    %c0_5 = arith.constant 0 : index
    %c0_6 = arith.constant 0 : index
    %7 = vector.load %arg4[%c0_5, %c0_6] : memref<8x512xf32, #tpu.memory_space<vmem>>, vector<8x512xf32>
    tpu.vector_store %arg4[%c0_5, %c0_6], %6 {strides = array<i32>} : memref<8x512xf32, #tpu.memory_space<vmem>>, vector<8x512xf32>,
    return
  }
  func.func @transform_0(%arg0: i32) -> (i32, i32) {
    %c0_i32 = arith.constant 0 : i32
    %c0_i32_0 = arith.constant 0 : i32
    %c0_i32_1 = arith.constant 0 : i32
    return %c0_i32, %c0_i32_0 : i32, i32
  }
  func.func @transform_1(%arg0: i32) -> (i32, i32) {
    %c0_i32 = arith.constant 0 : i32
    %c0_i32_0 = arith.constant 0 : i32
    %c0_i32_1 = arith.constant 0 : i32
    return %c0_i32, %c0_i32_0 : i32, i32
  }
  func.func @transform_2(%arg0: i32) -> (i32, i32) {
    %c0_i32 = arith.constant 0 : i32
    %c0_i32_0 = arith.constant 0 : i32
    return %arg0, %c0_i32 : i32, i32
  }
  func.func @transform_3(%arg0: i32) -> (i32, i32) {
    %c0_i32 = arith.constant 0 : i32
    %c0_i32_0 = arith.constant 0 : i32
    return %arg0, %c0_i32 : i32, i32
  }
}

</mosaic_0001>

<bundles_post_ra>
// kernel: tpu_custom_call.1
= control target key start
LH: loop header
LB: loop body
LE: loop exit
PB: predicated region body
PF: predicated region fallthrough
CT: control target
= control target key end

     0   :  { %10 = vsyncpa [#allocation5], 0  ;;  %s166_s0 = inlined_call_operand.<no memory space> [shape: f32[1,1], index: 0, kind: input, shape index: {}]   ;;  %s167_s1 = inlined_call_operand.<no memory space> [shape: f32[1,1], index: 1, kind: input, shape index: {}]   ;;  %s168_s2 = inlined_call_operand.hbm [shape: f32[8,512], index: 2, kind: input, shape index: {}]   ;;  %s169_s3 = inlined_call_operand.hbm [shape: f32[8,512], index: 3, kind: output, shape index: {}]  }
   0x1   :  { %11 = vsyncpa [#allocation6], 0  ;;  %s114_s12 = smov [#allocation4]   ;;  %s66_s16 = scalar_lea.hbm %s168_s2, 512 }
   0x2   :  { %s22_s13 = sshll.u32 %s114_s12, 4  ;;  %p67_p0 = scmp.ne.s32.totalorder %s168_s2, %s66_s16  ;;  %s23_s13 = int_to_ptr.vmem [resolvable:$true] %s22_s13 }
   0x3   :  { %p70_p1 = scmp.lt.u32.totalorder %s66_s16, %s168_s2 }
   0x5   :  { %p72_p2 = pnand %p70_p1, %p67_p0 }
   0x7   :  { %75 = shalt.err (!%p72_p2)
}
   0x8   :  { %s76_s21 = scalar_lea.vmem %s23_s13, 512  ;;  %p81_p4 = scmp.lt.s32.totalorder %s23_s13, %s23_s13 }
   0x9   :  { %p77_p3 = scmp.ne.s32.totalorder %s23_s13, %s76_s21  ;;  %p82_p5 = scmp.lt.s32.totalorder %s76_s21, %s76_s21 }
   0xb   :  { %p83_p6 = por %p82_p5, %p81_p4 }
   0xd   :  { %p84_p7 = pnand %p83_p6, %p77_p3 }
   0xf   :  { %87 = shalt.err (!%p84_p7)
}
  0x10   :  { %25 = dma.hbm_to_vmem [thread:$0]  %s168_s2, 512, %s23_s13, [#allocation5]  }
  0x11   :  { %110 = dma.done.wait [#allocation5], 512  }
  0x12   :  { %111 = vsyncadd [#allocation5], 4294966784  ;;  %v35_v0 = vstv %s166_s0  ;;  %v31_v1 = vld [vmem:[#allocation4] sm:$0xff]  ;;  %v40_v2 = vstv %s167_s1  ;;  %v32_v3 = vld [vmem:[#allocation4 + $0x8] sm:$0xff]  ;;  %s115_s28 = smov [#allocation7]  }
  0x13   :  { %v33_v4 = vld [vmem:[#allocation4 + $0x10] sm:$0xff]  ;;  %v36_v5 = vmul.f32 %v35_v0, %v31_v1  ;;  %v37_v6 = vmul.f32 %v35_v0, %v32_v3  ;;  %v34_v8 = vld [vmem:[#allocation4 + $0x18] sm:$0xff]  ;;  %s55_s29 = sshll.u32 %s115_s28, 4  ;;  %s56_s29 = int_to_ptr.vmem [resolvable:$true] %s55_s29 }
  0x14   :  { %v38_v7 = vmul.f32 %v35_v0, %v33_v4  ;;  %v39_v9 = vmul.f32 %v35_v0, %v34_v8  ;;  %s88_s0 = scalar_lea.vmem %s56_s29, 512  ;;  %p93_p9 = scmp.lt.s32.totalorder %s56_s29, %s56_s29 }
  0x15   :  { %v41_v10 = vadd.f32 %v40_v2, %v36_v5  ;;  %v42_v11 = vadd.f32 %v40_v2, %v37_v6  ;;  %p89_p8 = scmp.ne.s32.totalorder %s56_s29, %s88_s0  ;;  %p94_p10 = scmp.lt.s32.totalorder %s88_s0, %s88_s0 }
  0x16   :  { %v43_v12 = vadd.f32 %v40_v2, %v38_v7  ;;  %v44_v13 = vadd.f32 %v40_v2, %v39_v9 }
  0x17   :  { %45 = vst [vmem:[#allocation7] sm:$0xff] %v41_v10  ;;  %46 = vst [vmem:[#allocation7 + $0x8] sm:$0xff] %v42_v11  ;;  %p95_p11 = por %p94_p10, %p93_p9 }
  0x18   :  { %47 = vst [vmem:[#allocation7 + $0x10] sm:$0xff] %v43_v12  ;;  %48 = vst [vmem:[#allocation7 + $0x18] sm:$0xff] %v44_v13 }
  0x19   :  { %p96_p12 = pnand %p95_p11, %p89_p8 }
  0x1b   :  { %99 = shalt.err (!%p96_p12)
}
  0x1c   :  { %s100_s30 = scalar_lea.hbm %s169_s3, 512 }
  0x1d   :  { %p101_p13 = scmp.ne.s32.totalorder %s169_s3, %s100_s30  ;;  %p104_p0 = scmp.lt.u32.totalorder %s100_s30, %s169_s3 }
  0x1f   :  { %p106_p1 = pnand %p104_p0, %p101_p13 }
  0x21   :  { %109 = shalt.err (!%p106_p1)
}
  0x22   :  { %58 = dma.vmem_to_hbm [thread:$0]  %s56_s29, 512, %s169_s3, [#allocation6]  }
  0x23   :  { %112 = dma.done.wait [#allocation6], 512  }
  0x24   :  { %113 = vsyncadd [#allocation6], 4294966784 }
  0x25   :  { %62 = vsyncpa [#allocation5], 1 }
  0x26   :  { %63 = vsyncpa [#allocation6], 1 }

</bundles_post_ra>
